<compile_context>
chip_gen: v7x
topology: tpu7x:2x2x1
jax: 0.10.0
libtpu: 0.0.40
codegen_flags: <defaults>
</compile_context>

<pallas_src>
import jax
import jax.numpy as jnp
from jax import lax
from jax.experimental import pallas as pl
from jax.experimental.pallas import tpu as pltpu


def _round_up(v, m):
    return ((v + m - 1) // m) * m


def _fm_kernel(x_ref, rt_ref, v2_ref, o_ref):
    # x_ref : [TILE_B, n]  batch tile (streamed over the grid)
    # rt_ref: [k+1, n]     R^T = [V | w]^T (VMEM-resident across iterations)
    # v2_ref: [8, n]       row 0 = rowsum(V^2), rows 1..7 zero padding (VMEM-resident)
    # o_ref : [1, TILE_B]  lane-dense output row for this batch tile
    k = rt_ref.shape[0] - 1
    x = x_ref[...]
    rt = rt_ref[...]

    # Contract the feature axis of both operands (A @ B^T form on the MXU).
    dn = (((1,), (1,)), ((), ()))

    xr_t = lax.dot_general(rt, x, dn, preferred_element_type=jnp.float32)  # [k+1, TILE_B]
    xv_t = xr_t[:k, :]                                       # latent projections (x V)^T
    lin = xr_t[k:k + 1, :]                                   # linear term (x @ w), [1, TILE_B]
    part_1 = jnp.sum(xv_t * xv_t, axis=0, keepdims=True)     # [1, TILE_B] (sublane reduce)

    x2 = x * x                                               # f32 squares on the VPU
    # part_2[b] = sum_n x[b,n]^2 * rowsum(V^2)[n] -> row 0 of an 8-row-padded matvec.
    p2 = lax.dot_general(v2_ref[...], x2, dn, preferred_element_type=jnp.float32)  # [8, TILE_B]
    part_2 = p2[0:1, :]                                      # [1, TILE_B]

    o_ref[...] = (lin + 0.5 * (part_1 - part_2)).astype(o_ref.dtype)


def factorization_machine(x, V, w, bias=None, tile_b=None):
    """x: [B, n] f32, V: [n, k] f32, w: [n, 1] f32 (= Linear(n,1).weight.T), optional scalar bias."""
    B, n = x.shape
    n_v, k = V.shape
    assert n_v == n and w.shape == (n, 1)

    # Grid-invariant operand prep (tiny; done once, outside the kernel).
    rt = jnp.concatenate([V, w.astype(V.dtype)], axis=1).T.astype(jnp.float32)      # [k+1, n]
    v2 = jnp.pad(jnp.sum(V * V, axis=1)[None, :].astype(jnp.float32), ((0, 7), (0, 0)))  # [8, n]

    # Batch-tile selection: keep the double-buffered x window around <=16 MiB (f32),
    # which also fits v7x's smaller 64 MiB per-TC VMEM with headroom.
    n_lanes = _round_up(n, 128)
    if tile_b is None:
        cap = max(128, (16 * 1024 * 1024) // (2 * 4 * n_lanes))
        tile_b = min(512, (cap // 128) * 128)
    if B <= tile_b:
        tile_b = _round_up(B, 8)          # single tile: block == full (padded) batch
    else:
        tile_b = _round_up(tile_b, 128)   # multi-tile: lane-dense output needs 128-multiple
    b_pad = _round_up(B, tile_b)
    num_tiles = b_pad // tile_b
    xp = x if b_pad == B else jnp.pad(x, ((0, b_pad - B), (0, 0)))

    k1 = k + 1
    vmem_need = 4 * (2 * tile_b * n_lanes                     # double-buffered x tile
                     + 2 * (_round_up(k1, 8) + 8) * n_lanes   # resident R^T + rowsum(V^2)
                     + 4 * tile_b)                            # output rows
    vmem_limit = int(min(max(2 * vmem_need, 16 * 1024 * 1024), 64 * 1024 * 1024))

    out_row = pl.pallas_call(
        _fm_kernel,
        out_shape=jax.ShapeDtypeStruct((1, b_pad), jnp.float32),
        grid=(num_tiles,),
        in_specs=[
            pl.BlockSpec((tile_b, n), lambda i: (i, 0)),   # x: streamed over the batch
            pl.BlockSpec((k1, n), lambda i: (0, 0)),       # R^T: VMEM-resident
            pl.BlockSpec((8, n), lambda i: (0, 0)),        # rowsum(V^2): VMEM-resident
        ],
        out_specs=pl.BlockSpec((1, tile_b), lambda i: (0, i)),
        compiler_params=pltpu.CompilerParams(
            dimension_semantics=("parallel",),
            vmem_limit_bytes=vmem_limit,
        ),
        cost_estimate=pl.CostEstimate(
            flops=2 * b_pad * n * (k1 + 1),
            transcendentals=0,
            bytes_accessed=4 * (b_pad * n + (k1 + 8) * n + b_pad),
        ),
    )(xp, rt, v2)

    res = out_row[0, :B].reshape(B, 1)
    if bias is not None:
        res = res + jnp.asarray(bias, jnp.float32).reshape(1, 1)
    return res


if __name__ == "__main__":
    # Small shapes consistent with the module: B examples, n features, k latent factors.
    B, n, k = 256, 64, 16

    key = jax.random.PRNGKey(0)
    kx, kv, kw = jax.random.split(key, 3)
    x = jax.random.normal(kx, (B, n), dtype=jnp.float32)
    V = jax.random.normal(kv, (n, k), dtype=jnp.float32)          # torch.randn(n, k)
    w = jax.random.normal(kw, (n, 1), dtype=jnp.float32) * 0.1    # Linear(n,1,bias=False).weight.T

    # Pure-JAX reference mirroring the torch forward (f32-accurate matmuls).
    with jax.default_matmul_precision("highest"):
        part_1 = jnp.sum(jnp.square(x @ V), axis=1, keepdims=True)
        part_2 = jnp.sum((x * x) @ (V * V), axis=1, keepdims=True)
        ref = x @ w + 0.5 * (part_1 - part_2)

    out_single = jax.block_until_ready(factorization_machine(x, V, w))              # 1 batch tile
    out_tiled = jax.block_until_ready(factorization_machine(x, V, w, tile_b=128))   # 2 batch tiles

    assert out_single.shape == (B, 1) and out_tiled.shape == (B, 1)
    assert jnp.allclose(out_single, ref, atol=2e-3, rtol=2e-3), \
        float(jnp.max(jnp.abs(out_single - ref)))
    assert jnp.allclose(out_tiled, ref, atol=2e-3, rtol=2e-3), \
        float(jnp.max(jnp.abs(out_tiled - ref)))
    print("KERNEL_OK")
</pallas_src>

<mosaic_0001>
module attributes {stable_mosaic.version = 11 : i64} {
  func.func @_fm_kernel(%arg0: i32, %arg1: memref<256x64xf32, #tpu.memory_space<vmem>>, %arg2: memref<17x64xf32, #tpu.memory_space<vmem>>, %arg3: memref<8x64xf32, #tpu.memory_space<vmem>>, %arg4: memref<1x256xf32, #tpu.memory_space<vmem>>) attributes {dimension_semantics = [#tpu.dimension_semantics<parallel>], iteration_bounds = array<i64: 1>, scalar_prefetch = 0 : i64, scratch_operands = 0 : i64, tpu.core_type = #tpu.core_type<tc>, window_params = [{transform_indices = @transform_0, window_bounds = array<i64: 256, 64>}, {pipeline_mode = #tpu.pipeline_mode<synchronous>, transform_indices = @transform_1, window_bounds = array<i64: 17, 64>}, {pipeline_mode = #tpu.pipeline_mode<synchronous>, transform_indices = @transform_2, window_bounds = array<i64: 8, 64>}, {transform_indices = @transform_3, window_bounds = array<i64: 1, 256>}]} {
    %c0 = arith.constant 0 : index
    %c0_0 = arith.constant 0 : index
    %0 = vector.load %arg1[%c0, %c0_0] : memref<256x64xf32, #tpu.memory_space<vmem>>, vector<256x64xf32>
    %c0_1 = arith.constant 0 : index
    %c0_2 = arith.constant 0 : index
    %1 = vector.load %arg2[%c0_1, %c0_2] : memref<17x64xf32, #tpu.memory_space<vmem>>, vector<17x64xf32>
    %cst = arith.constant dense<0.000000e+00> : vector<17x256xf32>
    %2 = tpu.matmul %1, %0, %cst {dimension_numbers = #tpu.dot_dimension_numbers<[1], [1], [0], [0], [0, 0, 1, 0], [], []>} : vector<17x64xf32>, vector<256x64xf32>, vector<17x256xf32> -> vector<17x256xf32>
    %3 = vector.extract_strided_slice %2 {offsets = [0, 0], sizes = [16, 256], strides = [1, 1]} : vector<17x256xf32> to vector<16x256xf32>
    %4 = vector.extract_strided_slice %2 {offsets = [16, 0], sizes = [1, 256], strides = [1, 1]} : vector<17x256xf32> to vector<1x256xf32>
    %5 = arith.mulf %3, %3 : vector<16x256xf32>
    %cst_3 = arith.constant dense<0.000000e+00> : vector<256xf32>
    %6 = vector.multi_reduction <add>, %5, %cst_3 [0] : vector<16x256xf32> to vector<256xf32>
    %7 = vector.shape_cast %6 : vector<256xf32> to vector<1x256xf32>
    %8 = arith.mulf %0, %0 : vector<256x64xf32>
    %c0_4 = arith.constant 0 : index
    %c0_5 = arith.constant 0 : index
    %9 = vector.load %arg3[%c0_4, %c0_5] : memref<8x64xf32, #tpu.memory_space<vmem>>, vector<8x64xf32>
    %cst_6 = arith.constant dense<0.000000e+00> : vector<8x256xf32>
    %10 = tpu.matmul %9, %8, %cst_6 {dimension_numbers = #tpu.dot_dimension_numbers<[1], [1], [0], [0], [0, 0, 1, 0], [], []>} : vector<8x64xf32>, vector<256x64xf32>, vector<8x256xf32> -> vector<8x256xf32>
    %11 = vector.extract_strided_slice %10 {offsets = [0, 0], sizes = [1, 256], strides = [1, 1]} : vector<8x256xf32> to vector<1x256xf32>
    %12 = arith.subf %7, %11 : vector<1x256xf32>
    %cst_7 = arith.constant 5.000000e-01 : f32
    %13 = vector.broadcast %cst_7 : f32 to vector<1x256xf32>
    %14 = arith.mulf %13, %12 : vector<1x256xf32>
    %15 = arith.addf %4, %14 : vector<1x256xf32>
    %c0_8 = arith.constant 0 : index
    %c0_9 = arith.constant 0 : index
    %16 = vector.load %arg4[%c0_8, %c0_9] : memref<1x256xf32, #tpu.memory_space<vmem>>, vector<1x256xf32>
    tpu.vector_store %arg4[%c0_8, %c0_9], %15 {strides = array<i32>} : memref<1x256xf32, #tpu.memory_space<vmem>>, vector<1x256xf32>,
    return
  }
  func.func @transform_0(%arg0: i32) -> (i32, i32) {
    %c0_i32 = arith.constant 0 : i32
    %c0_i32_0 = arith.constant 0 : i32
    return %arg0, %c0_i32 : i32, i32
  }
  func.func @transform_1(%arg0: i32) -> (i32, i32) {
    %c0_i32 = arith.constant 0 : i32
    %c0_i32_0 = arith.constant 0 : i32
    %c0_i32_1 = arith.constant 0 : i32
    return %c0_i32, %c0_i32_0 : i32, i32
  }
  func.func @transform_2(%arg0: i32) -> (i32, i32) {
    %c0_i32 = arith.constant 0 : i32
    %c0_i32_0 = arith.constant 0 : i32
    %c0_i32_1 = arith.constant 0 : i32
    return %c0_i32, %c0_i32_0 : i32, i32
  }
  func.func @transform_3(%arg0: i32) -> (i32, i32) {
    %c0_i32 = arith.constant 0 : i32
    %c0_i32_0 = arith.constant 0 : i32
    return %c0_i32, %arg0 : i32, i32
  }
}

</mosaic_0001>

<bundles_post_ra>
// kernel: tpu_custom_call.1
= control target key start
LH: loop header
LB: loop body
LE: loop exit
PB: predicated region body
PF: predicated region fallthrough
CT: control target
= control target key end

     0   :  { %vm50_vm0 = vcmask 523264   ;;  %s993_s0 = inlined_call_operand.vmem [shape: f32[256,64], index: 0, kind: input, shape index: {}]   ;;  %s994_s1 = inlined_call_operand.vmem [shape: f32[17,64], index: 1, kind: input, shape index: {}]   ;;  %s995_s2 = inlined_call_operand.vmem [shape: f32[8,64], index: 2, kind: input, shape index: {}]   ;;  %s996_s3 = inlined_call_operand.hbm [shape: f32[1,256], index: 3, kind: output, shape index: {}]  }
   0x1   :  { %v31_v0 = vld [vmem:[%s993_s0 + $0x80] sm:$0xff]  ;;  %v32_v1 = vld [vmem:[%s993_s0 + $0x88] sm:$0xff]  ;;  %vm798_vm1 = vmpackc.low %vm50_vm0, %vm50_vm0 }
   0x2   :  { %v15_v2 = vld [vmem:[%s993_s0] sm:$0xff]  ;;  %v643_v3 = vpack.c.bf16 %v32_v1, %v31_v0  ;;  %v16_v5 = vld [vmem:[%s993_s0 + $0x8] sm:$0xff]  ;;  %v33_v6 = vld [vmem:[%s993_s0 + $0x90] sm:$0xff]  ;;  %v273_v7 = vmul.f32 %v31_v0, %v31_v0  ;;  %v274_v8 = vmul.f32 %v32_v1, %v32_v1 }
   0x3   :  { %v257_v9 = vmul.f32 %v15_v2, %v15_v2  ;;  %v646_v10 = vpack.c.bf16 %v16_v5, %v15_v2  ;;  %v34_v11 = vld [vmem:[%s993_s0 + $0x98] sm:$0xff]  ;;  %v258_v12 = vmul.f32 %v16_v5, %v16_v5  ;;  %v275_v13 = vmul.f32 %v33_v6, %v33_v6  ;;  %v17_v18 = vld [vmem:[%s993_s0 + $0x10] sm:$0xff]  ;;  %v35_v21 = vld [vmem:[%s993_s0 + $0xa0] sm:$0xff] }
   0x4   :  { %645 = vmatprep.subr.msk.bf16.mxu0 %vm798_vm1, %v643_v3  ;;  %v649_v14 = vpack.c.bf16 %v34_v11, %v33_v6  ;;  %v691_v15 = vpack.c.bf16 %v274_v8, %v273_v7  ;;  %v276_v16 = vmul.f32 %v34_v11, %v34_v11  ;;  %v18_v19 = vld [vmem:[%s993_s0 + $0x18] sm:$0xff]  ;;  %v36_v22 = vld [vmem:[%s993_s0 + $0xa8] sm:$0xff]  ;;  %v259_v23 = vmul.f32 %v17_v18, %v17_v18  ;;  %v838_v31 = vld [vmem:[%s994_s1] sm:$0xff] }
   0x5   :  { %648 = vmatpush3.bf16.xpose.msk.msra.mxu0 %vm798_vm1, %v646_v10  ;;  %v694_v17 = vpack.c.bf16 %v258_v12, %v257_v9  ;;  %v260_v24 = vmul.f32 %v18_v19, %v18_v19  ;;  %v277_v25 = vmul.f32 %v35_v21, %v35_v21  ;;  %v278_v26 = vmul.f32 %v36_v22, %v36_v22 }
   0x6   :  { %651 = vmatprep.subr.msk.bf16.mxu0 %vm798_vm1, %v649_v14  ;;  %693 = vmatprep.subr.msk.bf16.mxu1 %vm798_vm1, %v691_v15  ;;  %v697_v20 = vpack.c.bf16 %v276_v16, %v275_v13  ;;  %v652_v27 = vpack.c.bf16 %v18_v19, %v17_v18  ;;  %v655_v28 = vpack.c.bf16 %v36_v22, %v35_v21 }
   0x7   :  { %696 = vmatpush3.bf16.xpose.msk.msra.mxu1 %vm798_vm1, %v694_v17  ;;  %v700_v29 = vpack.c.bf16 %v260_v24, %v259_v23  ;;  %v703_v30 = vpack.c.bf16 %v278_v26, %v277_v25 }
   0x8   :  { %699 = vmatprep.subr.msk.bf16.mxu1 %vm798_vm1, %v697_v20 }
   0xd   :  { %654 = vmatpush3.bf16.xpose.msk.msra.mxu0 %vm798_vm1, %v652_v27 }
   0xe   :  { %8 = vsyncpa [#allocation3], 0  ;;  %657 = vmatprep.subr.msk.bf16.mxu0 %vm798_vm1, %v655_v28  ;;  %v19_v32 = vld [vmem:[%s993_s0 + $0x20] sm:$0xff]  ;;  %v20_v33 = vld [vmem:[%s993_s0 + $0x28] sm:$0xff]  ;;  %603 = vmatprep.mubr.msk.f32.mxu0 %vm50_vm0, %v838_v31 }
   0xf   :  { %v853_v34 = vld [vmem:[%s995_s2] sm:$0xff]  ;;  %v37_v35 = vld [vmem:[%s993_s0 + $0xb0] sm:$0xff]  ;;  %v38_v36 = vld [vmem:[%s993_s0 + $0xb8] sm:$0xff]  ;;  %702 = vmatpush3.bf16.xpose.msk.msra.mxu1 %vm798_vm1, %v700_v29  ;;  %v261_v37 = vmul.f32 %v19_v32, %v19_v32  ;;  %v262_v38 = vmul.f32 %v20_v33, %v20_v33  ;;  %v658_v41 = vpack.c.bf16 %v20_v33, %v19_v32 }
  0x10   :  { %705 = vmatprep.subr.msk.bf16.mxu1 %vm798_vm1, %v703_v30  ;;  %v279_v39 = vmul.f32 %v37_v35, %v37_v35  ;;  %v280_v40 = vmul.f32 %v38_v36, %v38_v36  ;;  %641 = vmatprep.mubr.msk.f32.mxu1 %vm50_vm0, %v853_v34  ;;  %v661_v42 = vpack.c.bf16 %v38_v36, %v37_v35  ;;  %v21_v45 = vld [vmem:[%s993_s0 + $0x30] sm:$0xff]  ;;  %v22_v46 = vld [vmem:[%s993_s0 + $0x38] sm:$0xff]  ;;  %v39_v47 = vld [vmem:[%s993_s0 + $0xc0] sm:$0xff] }
  0x11   :  { %v706_v43 = vpack.c.bf16 %v262_v38, %v261_v37  ;;  %v40_v48 = vld [vmem:[%s993_s0 + $0xc8] sm:$0xff]  ;;  %v263_v49 = vmul.f32 %v21_v45, %v21_v45  ;;  %v264_v50 = vmul.f32 %v22_v46, %v22_v46  ;;  %v281_v51 = vmul.f32 %v39_v47, %v39_v47  ;;  %v23_v57 = vld [vmem:[%s993_s0 + $0x40] sm:$0xff]  ;;  %v41_v59 = vld [vmem:[%s993_s0 + $0xd0] sm:$0xff] }
  0x12   :  { %v709_v44 = vpack.c.bf16 %v280_v40, %v279_v39  ;;  %v282_v52 = vmul.f32 %v40_v48, %v40_v48  ;;  %v664_v53 = vpack.c.bf16 %v22_v46, %v21_v45  ;;  %v667_v54 = vpack.c.bf16 %v40_v48, %v39_v47  ;;  %v24_v58 = vld [vmem:[%s993_s0 + $0x48] sm:$0xff]  ;;  %v42_v60 = vld [vmem:[%s993_s0 + $0xd8] sm:$0xff]  ;;  %v25_v6 = vld [vmem:[%s993_s0 + $0x50] sm:$0xff] }
  0x13   :  { %v712_v55 = vpack.c.bf16 %v264_v50, %v263_v49  ;;  %v265_v61 = vmul.f32 %v23_v57, %v23_v57  ;;  %v266_v62 = vmul.f32 %v24_v58, %v24_v58  ;;  %v283_v63 = vmul.f32 %v41_v59, %v41_v59  ;;  %v26_v7 = vld [vmem:[%s993_s0 + $0x58] sm:$0xff]  ;;  %v43_v8 = vld [vmem:[%s993_s0 + $0xe0] sm:$0xff]  ;;  %v44_v9 = vld [vmem:[%s993_s0 + $0xe8] sm:$0xff] }
  0x14   :  { %v715_v56 = vpack.c.bf16 %v282_v52, %v281_v51  ;;  %v284_v0 = vmul.f32 %v42_v60, %v42_v60  ;;  %v670_v1 = vpack.c.bf16 %v24_v58, %v23_v57  ;;  %v673_v2 = vpack.c.bf16 %v42_v60, %v41_v59  ;;  %v27_v18 = vld [vmem:[%s993_s0 + $0x60] sm:$0xff]  ;;  %v28_v19 = vld [vmem:[%s993_s0 + $0x68] sm:$0xff]  ;;  %v45_v20 = vld [vmem:[%s993_s0 + $0xf0] sm:$0xff] }
  0x15   :  { %660 = vmatpush3.bf16.xpose.msk.msra.mxu0 %vm798_vm1, %v658_v41  ;;  %v718_v3 = vpack.c.bf16 %v266_v62, %v265_v61  ;;  %v267_v10 = vmul.f32 %v25_v6, %v25_v6  ;;  %v268_v11 = vmul.f32 %v26_v7, %v26_v7  ;;  %v285_v12 = vmul.f32 %v43_v8, %v43_v8  ;;  %v46_v21 = vld [vmem:[%s993_s0 + $0xf8] sm:$0xff]  ;;  %v29_v30 = vld [vmem:[%s993_s0 + $0x70] sm:$0xff]  ;;  %v48_v38 = vld [vmem:[%s994_s1 + $0x8] sm:$0xff] }
  0x16   :  { %663 = vmatprep.subr.msk.bf16.mxu0 %vm798_vm1, %v661_v42  ;;  %v721_v5 = vpack.c.bf16 %v284_v0, %v283_v63  ;;  %v286_v13 = vmul.f32 %v44_v9, %v44_v9  ;;  %v676_v14 = vpack.c.bf16 %v26_v7, %v25_v6  ;;  %v679_v15 = vpack.c.bf16 %v44_v9, %v43_v8  ;;  %v30_v32 = vld [vmem:[%s993_s0 + $0x78] sm:$0xff]  ;;  %v49_v39 = vld [vmem:[%s994_s1 + $0x10] sm:$0x1]  ;;  %s766_s1 = smov [#allocation2]  }
  0x17   :  { %708 = vmatpush3.bf16.xpose.msk.msra.mxu1 %vm798_vm1, %v706_v43  ;;  %v724_v16 = vpack.c.bf16 %v268_v11, %v267_v10  ;;  %v269_v22 = vmul.f32 %v27_v18, %v27_v18  ;;  %v270_v23 = vmul.f32 %v28_v19, %v28_v19  ;;  %v287_v24 = vmul.f32 %v45_v20, %v45_v20  ;;  %s495_s27 = sshll.u32 %s766_s1, 4  ;;  %s496_s27 = int_to_ptr.vmem [resolvable:$true] %s495_s27 }
  0x18   :  { %711 = vmatprep.subr.msk.bf16.mxu1 %vm798_vm1, %v709_v44  ;;  %v727_v17 = vpack.c.bf16 %v286_v13, %v285_v12  ;;  %v288_v25 = vmul.f32 %v46_v21, %v46_v21  ;;  %v682_v26 = vpack.c.bf16 %v28_v19, %v27_v18  ;;  %v685_v27 = vpack.c.bf16 %v46_v21, %v45_v20  ;;  %s741_s28 = scalar_lea.vmem %s496_s27, 32  ;;  %p746_p1 = scmp.lt.s32.totalorder %s496_s27, %s496_s27 }
  0x19   :  { %v730_v28 = vpack.c.bf16 %v270_v23, %v269_v22  ;;  %v271_v33 = vmul.f32 %v29_v30, %v29_v30  ;;  %v272_v35 = vmul.f32 %v30_v32, %v30_v32  ;;  %v688_v36 = vpack.c.bf16 %v30_v32, %v29_v30  ;;  %p742_p0 = scmp.ne.s32.totalorder %s496_s27, %s741_s28  ;;  %p747_p2 = scmp.lt.s32.totalorder %s741_s28, %s741_s28 }
  0x1a   :  { %v733_v29 = vpack.c.bf16 %v288_v25, %v287_v24  ;;  %v765_v61 = vmov 1966171168   ;;  %v472_v63 = vlaneseq }
  0x1b   :  { %v736_v37 = vpack.c.bf16 %v272_v35, %v271_v33  ;;  %v470_v62 = vunpack.c.l.s4 %v765_v61  ;;  %p748_p3 = por %p747_p2, %p746_p1 }
  0x1c   :  { %v473_v6 = vshrl.u32 %v472_v63, 7  ;;  %vm486_vm2 = vcmp.lt.s32.totalorder %v472_v63, 256 }
  0x1d   :  { %666 = vmatpush3.bf16.xpose.msk.msra.mxu0 %vm798_vm1, %v664_v53  ;;  %p749_p4 = pnand %p748_p3, %p742_p0 }
  0x1e   :  { %669 = vmatprep.subr.msk.bf16.mxu0 %vm798_vm1, %v667_v54 }
  0x1f   :  { %714 = vmatpush3.bf16.xpose.msk.msra.mxu1 %vm798_vm1, %v712_v55 }
  0x20   :  { %717 = vmatprep.subr.msk.bf16.mxu1 %vm798_vm1, %v715_v56 }
  0x25   :  { %672 = vmatpush3.bf16.xpose.msk.msra.mxu0 %vm798_vm1, %v670_v1 }
  0x26   :  { %675 = vmatprep.subr.msk.bf16.mxu0 %vm798_vm1, %v673_v2 }
  0x27   :  { %720 = vmatpush3.bf16.xpose.msk.msra.mxu1 %vm798_vm1, %v718_v3 }
  0x28   :  { %723 = vmatprep.subr.msk.bf16.mxu1 %vm798_vm1, %v721_v5  ;;  %v471_v5 = vunpack.c.0.s8 %v470_v62 }
  0x2a   :  { %v474_v11 = vsub.s32 %v471_v5, %v473_v6 }
  0x2d   :  { %678 = vmatpush3.bf16.xpose.msk.msra.mxu0 %vm798_vm1, %v676_v14 }
  0x2e   :  { %681 = vmatprep.subr.msk.bf16.mxu0 %vm798_vm1, %v679_v15 }
  0x2f   :  { %726 = vmatpush3.bf16.xpose.msk.msra.mxu1 %vm798_vm1, %v724_v16 }
  0x30   :  { %729 = vmatprep.subr.msk.bf16.mxu1 %vm798_vm1, %v727_v17 }
  0x35   :  { %684 = vmatpush3.bf16.xpose.msk.msra.mxu0 %vm798_vm1, %v682_v26 }
  0x36   :  { %687 = vmatprep.subr.msk.bf16.mxu0 %vm798_vm1, %v685_v27 }
  0x37   :  { %732 = vmatpush3.bf16.xpose.msk.msra.mxu1 %vm798_vm1, %v730_v28 }
  0x38   :  { %735 = vmatprep.subr.msk.bf16.mxu1 %vm798_vm1, %v733_v29 }
  0x3d   :  { %690 = vmatpush3.bf16.xpose.msk.msra.mxu0 %vm798_vm1, %v688_v36 }
  0x3f   :  { %738 = vmatpush3.bf16.xpose.msk.msra.mxu1 %vm798_vm1, %v736_v37 }
  0x44   :  { %604 = vmatmul.mubr.msk.f32.vlgmr.msra.gmra.mrb[0].mxu0 %vm50_vm0, %v838_v31 }
  0x45   :  { %605 = vmatprep.mubr.msk.f32.mxu0 %vm50_vm0, %v48_v38 }
  0x46   :  { %642 = vmatmul.mubr.msk.f32.vlgmr.msra.gmra.mrb[0].mxu1 %vm50_vm0, %v853_v34 }
  0x48   :  { %606 = vmatmul.mubr.msk.f32.gmra.mrb[2].mxu0 %vm50_vm0, %v48_v38 }
  0x49   :  { %607 = vmatprep.mubr.msk.f32.mxu0 %vm50_vm0, %v49_v39 }
  0x4c   :  { %608 = vmatmul.mubr.msk.f32.gmra.mrb[4].mxu0 %vm50_vm0, %v49_v39 }
 0x117   :  { %v222_v4 = vpop.f32.mrb[0].mxu0 }
 0x118   :  { %v224_v40 = vpop.f32.mrb[1].mxu0  ;;  %v239_v43 = vmul.f32 %v222_v4, %v222_v4 }
 0x119   :  { %v455_v41 = vpop.f32.mrb[0].mxu1  ;;  %v240_v46 = vmul.f32 %v224_v40, %v224_v40 }
 0x11a   :  { %v457_v42 = vpop.f32.mrb[1].mxu1 }
 0x11b   :  { %v228_v31 = vpop.f32.mrb[2].mxu0 }
 0x11c   :  { %v241_v44 = vmul.f32 %v228_v31, %v228_v31  ;;  %v230_v45 = vpop.f32.mrb[3].mxu0 }
 0x11d   :  { %v242_v34 = vmul.f32 %v230_v45, %v230_v45 }
 0x11e   :  { %v243_v47 = vadd.f32 %v241_v44, %v239_v43 }
 0x11f   :  { %v250_v48 = vadd.f32 %v242_v34, %v240_v46  ;;  %v234_v49 = vpop.f32.mrb[4].mxu0 }
 0x120   :  { %v244_v50 = vrot.slane %v243_v47, 4  ;;  %v236_v51 = vpop.f32.mrb[5].mxu0 }
 0x121   :  { %v251_v52 = vrot.slane %v250_v48, 4 }
 0x122   :  { %v245_v53 = vadd.f32 %v244_v50, %v243_v47 }
 0x123   :  { %v252_v54 = vadd.f32 %v251_v52, %v250_v48 }
 0x124   :  { %v246_v55 = vrot.slane %v245_v53, 2 }
 0x125   :  { %v253_v56 = vrot.slane %v252_v54, 2 }
 0x126   :  { %v247_v57 = vadd.f32 %v246_v55, %v245_v53 }
 0x127   :  { %v254_v58 = vadd.f32 %v253_v56, %v252_v54 }
 0x128   :  { %v248_v59 = vrot.slane %v247_v57, 1 }
 0x129   :  { %v255_v60 = vrot.slane %v254_v58, 1 }
 0x12a   :  { %v249_v0 = vadd.f32 %v248_v59, %v247_v57 }
 0x12b   :  { %v256_v1 = vadd.f32 %v255_v60, %v254_v58 }
 0x12c   :  { %v460_v2 = vsub.f32 %v249_v0, %v455_v41 }
 0x12d   :  { %v461_v3 = vsub.f32 %v256_v1, %v457_v42 }
 0x12e   :  { %v462_v7 = vmul.f32 0.5, %v460_v2 }
 0x12f   :  { %v463_v8 = vmul.f32 0.5, %v461_v3 }
 0x130   :  { %v464_v9 = vadd.f32 %v462_v7, %v234_v49 }
 0x131   :  { %v465_v10 = vadd.f32 %v463_v8, %v236_v51 }
 0x133   :  { %v468_v12 = vcombine.low %v464_v9, %v465_v10 }
 0x135   :  { %v475_v13 = vrot.slane %v468_v12, %v474_v11 }
 0x137   :  { %v482_v14 = vrot.slane %v475_v13, %v474_v11 }
 0x139   :  { %488 = vst.msk [vmem:[#allocation2] sm:$0x3] %vm486_vm2, %v482_v14 }
 0x13a   :  { %752 = shalt.err (!%p749_p4)
}
 0x13b   :  { %s753_s4 = scalar_lea.hbm %s996_s3, 32 }
 0x13c   :  { %p754_p5 = scmp.ne.s32.totalorder %s996_s3, %s753_s4  ;;  %p757_p6 = scmp.lt.u32.totalorder %s753_s4, %s996_s3 }
 0x13e   :  { %p759_p7 = pnand %p757_p6, %p754_p5 }
 0x140   :  { %762 = shalt.err (!%p759_p7)
}
 0x141   :  { %498 = dma.vmem_to_hbm [thread:$0]  %s496_s27, 32, %s996_s3, [#allocation3]  }
 0x142   :  { %763 = dma.done.wait [#allocation3], 32  }
 0x143   :  { %764 = vsyncadd [#allocation3], 4294967264 }
 0x144   :  { %502 = vsyncpa [#allocation3], 1 }

</bundles_post_ra>
